<compile_context>
chip_gen: v5e
topology: v5e:2x2
jax: 0.10.0
libtpu: 0.0.40
codegen_flags: <defaults>
</compile_context>

<pallas_src>
import math

import jax
import jax.numpy as jnp
import numpy as np
from jax.experimental import pallas as pl
from jax.experimental.pallas import tpu as pltpu


def _en_embedding_kernel(x_ref, w_ref, add_ref, o_ref):
    # x_ref  : (TM, Kp)  lane-packed patch rows (zeros at global-token slots)
    # w_ref  : (Kp, Dp)  (block-diagonal) value-embedding weight, VMEM-resident
    # add_ref: (TM, Dp)  PE rows / global-token rows, VMEM-resident
    # o_ref  : (TM, Dp)  final output rows, already in (b, n, patch|glb) order
    acc = jnp.dot(x_ref[...], w_ref[...], preferred_element_type=jnp.float32)
    o_ref[...] = (acc + add_ref[...]).astype(o_ref.dtype)


def make_positional_embedding(d_model, max_len=4096):
    position = jnp.arange(max_len, dtype=jnp.float32)[:, None]
    div_term = jnp.exp(
        jnp.arange(0, d_model, 2, dtype=jnp.float32) * (-(math.log(10000.0) / d_model))
    )
    pe = jnp.zeros((max_len, d_model), dtype=jnp.float32)
    pe = pe.at[:, 0::2].set(jnp.sin(position * div_term))
    pe = pe.at[:, 1::2].set(jnp.cos(position * div_term))
    return pe


def _device_tuning():
    """Per-generation knobs (v5e / v6e / v7x differ in VMEM size and HBM BW)."""
    try:
        kind = jax.devices()[0].device_kind.lower()
    except Exception:
        kind = ""
    if "v6" in kind:
        # v6e: 128 MiB VMEM, single TensorCore -> bigger tiles, generous limit.
        return dict(vmem_cap=96 << 20, bytes_target=8 << 20, min_steps=2)
    if "v5e" in kind or "v5 lite" in kind or "v5lite" in kind:
        # v5e: lowest HBM BW, 1 vst slot -> modest tiles, explicit (>16 MiB) limit.
        return dict(vmem_cap=48 << 20, bytes_target=3 << 20, min_steps=2)
    # v7x (64 MiB physical VMEM, 2 TensorCores) and unknown chips: conservative
    # cap, >=4 steps so each core still gets an internally pipelined stream.
    return dict(vmem_cap=48 << 20, bytes_target=6 << 20, min_steps=4)


def _choose_row_tile(rows, period, lanes, *, bytes_target, min_steps):
    """Pick (TM, padded_rows) for the packed row slab.

    TM is a multiple of `period` (so the resident additive tile repeats exactly
    and keeps a constant index map) and a multiple of 8 (sublane-aligned
    blocks) unless it equals the full (padded) extent.  Prefers tiles that
    divide the row count exactly (no padding / no output slice) and an even
    grid count (v7x 2-TensorCore load balance).
    """
    g = math.gcd(period, 8)
    base = period * (8 // g)          # smallest 8-aligned multiple of the period
    if rows < min_steps * base:
        # Small / awkward problems: one full-extent block (always a legal block
        # shape, no padding, no output slice).
        # TODO(synk): a very large period (huge n_vars) with no 8-aligned
        # divisor lands here and could exceed VMEM; a scalar-prefetch phase
        # index would lift the multiple-of-period requirement.
        return rows, rows
    row_target = max(base, bytes_target // (lanes * 4))
    max_tm = min(row_target, rows // min_steps)
    max_k = max(1, max_tm // base)
    best = None
    for k in range(1, max_k + 1):
        tm = k * base
        if rows % tm == 0:
            steps = rows // tm
            score = (steps % 2 == 0, k)   # even grid first, then biggest tile
            if best is None or score > best[0]:
                best = (score, tm)
    if best is not None:
        return best[1], rows
    tm = max_k * base                      # no exact divisor: pad rows + slice output
    return tm, ((rows + tm - 1) // tm) * tm


def _round_up(v, m):
    return ((v + m - 1) // m) * m


def en_embedding(x, w_value, glb_token, pe_table, patch_len):
    """Pallas implementation of EnEmbedding.forward.

    x        : (B, L, N) float32            (same layout the PyTorch module receives)
    w_value  : (patch_len, d_model)          == nn.Linear(patch_len, d_model).weight.T
    glb_token: (1, N, 1, d_model)
    pe_table : (max_len, d_model)
    returns  : ((B*N, P+1, d_model), N)
    """
    B, L, N = x.shape
    P = L // patch_len
    d_model = w_value.shape[1]
    period = N * (P + 1)             # additive pattern repeats once per batch element
    R = B * period                   # rows of the flat (row, d_model) output slab

    # -- 1. patch + zero-row augmentation (input side, patch_len-wide -> cheap) --
    xp = jnp.transpose(x, (0, 2, 1))[:, :, : P * patch_len].reshape(B, N, P, patch_len)
    xp = jnp.pad(xp, ((0, 0), (0, 0), (0, 1), (0, 0)))            # (B, N, P+1, patch_len)
    x_flat = xp.reshape(R, patch_len)

    # -- 2. additive table: PE on patch rows, per-variable global token on zero rows --
    pe_rows = pe_table[:P].astype(jnp.float32)                    # (P, d_model)
    glb_rows = jnp.reshape(glb_token.astype(jnp.float32), (N, d_model))
    add_period = jnp.concatenate(
        [jnp.broadcast_to(pe_rows[None], (N, P, d_model)), glb_rows[:, None, :]],
        axis=1,
    ).reshape(period, d_model)

    # -- 3. lane packing: fold g rows into one 128-lane row when d_model < 128 --
    gpack = 1
    if d_model < 128 and 128 % d_model == 0:
        gpack = math.gcd(128 // d_model, period)   # must divide the additive period
    Kp, Dp = gpack * patch_len, gpack * d_model
    Rp, period_p = R // gpack, period // gpack
    if gpack > 1:
        x_pk = x_flat.reshape(Rp, Kp)
        w_pk = jnp.kron(jnp.eye(gpack, dtype=w_value.dtype), w_value)   # block-diagonal
        add_pk = add_period.reshape(period_p, Dp)
    else:
        x_pk, w_pk, add_pk = x_flat, w_value, add_period

    # -- 4. tiles / grid, per-generation --
    tune = _device_tuning()
    TM, Rp_pad = _choose_row_tile(
        Rp, period_p, Dp, bytes_target=tune["bytes_target"], min_steps=tune["min_steps"]
    )
    if Rp_pad != Rp:                  # only for awkward B*N*(P+1) factorizations
        x_pk = jnp.pad(x_pk, ((0, Rp_pad - Rp), (0, 0)))
    grid = Rp_pad // TM
    add_tile = jnp.tile(add_pk, (TM // period_p, 1))              # (TM, Dp), resident

    # VMEM accounting on padded tiled-layout sizes; keep headroom under physical.
    in_blk = _round_up(TM, 8) * _round_up(Kp, 128) * 4
    out_blk = _round_up(TM, 8) * _round_up(Dp, 128) * 4
    w_bytes = _round_up(Kp, 8) * _round_up(Dp, 128) * 4
    need = 2 * (in_blk + out_blk) + 2 * (out_blk + w_bytes)   # worst case: everything double-buffered
    vmem_limit = int(min(max(need + (8 << 20), 32 << 20), tune["vmem_cap"]))

    def run(single_buffer_constants):
        const_kw = {"pipeline_mode": pl.Buffered(1)} if single_buffer_constants else {}
        return pl.pallas_call(
            _en_embedding_kernel,
            out_shape=jax.ShapeDtypeStruct((Rp_pad, Dp), x.dtype),
            grid_spec=pltpu.PrefetchScalarGridSpec(
                num_scalar_prefetch=0,
                grid=(grid,),
                in_specs=[
                    # Block last dims equal the full array extent; the row dim is
                    # 8-aligned or full-extent -- keep it that way if re-tiling.
                    pl.BlockSpec((TM, Kp), lambda i: (i, 0)),
                    pl.BlockSpec((Kp, Dp), lambda i: (0, 0), **const_kw),
                    pl.BlockSpec((TM, Dp), lambda i: (0, 0), **const_kw),
                ],
                out_specs=pl.BlockSpec((TM, Dp), lambda i: (i, 0)),
            ),
            compiler_params=pltpu.CompilerParams(
                dimension_semantics=("parallel",),
                vmem_limit_bytes=vmem_limit,
            ),
        )(x_pk, w_pk, add_tile)

    try:
        out_pk = run(True)      # single-buffer the constant-index operands
    except Exception:
        out_pk = run(False)     # fallback if pipeline_mode/Buffered(1) unsupported

    if Rp_pad != Rp:
        out_pk = out_pk[:Rp]
    out = out_pk.reshape(B * N, P + 1, d_model)   # contiguous relabel: free
    # TODO(synk): nn.Dropout treated as identity (eval mode); train-time RNG dropout not implemented.
    # TODO(synk): emit bf16 output (halves store traffic) if the downstream model runs in bf16.
    return out, N


def en_embedding_reference(x, w_value, glb_token, pe_table, patch_len):
    """Plain-JAX reference mirroring the PyTorch forward."""
    B, L, N = x.shape
    P = L // patch_len
    d_model = w_value.shape[1]
    xp = jnp.transpose(x, (0, 2, 1))[:, :, : P * patch_len].reshape(B * N, P, patch_len)
    emb = xp @ w_value + pe_table[:P][None]            # (B*N, P, d_model)
    emb = emb.reshape(B, N, P, d_model)
    glb = jnp.broadcast_to(glb_token, (B, N, 1, d_model))
    out = jnp.concatenate([emb, glb], axis=2).reshape(B * N, P + 1, d_model)
    return out, N


if __name__ == "__main__":
    def check(B, L, N, patch_len, d_model, seed):
        key = jax.random.PRNGKey(seed)
        kx, kw, kg = jax.random.split(key, 3)
        x = jax.random.normal(kx, (B, L, N), dtype=jnp.float32)
        # nn.Linear(patch_len, d_model, bias=False): store the transposed weight.
        w_value = jax.random.normal(kw, (patch_len, d_model), dtype=jnp.float32) * 0.1
        glb_token = jax.random.normal(kg, (1, N, 1, d_model), dtype=jnp.float32)
        pe_table = make_positional_embedding(d_model, max_len=4096)

        out, n_vars = en_embedding(x, w_value, glb_token, pe_table, patch_len)
        out = jax.block_until_ready(out)

        ref, _ = en_embedding_reference(x, w_value, glb_token, pe_table, patch_len)
        np.testing.assert_allclose(np.asarray(out), np.asarray(ref), rtol=1e-3, atol=1e-3)
        assert out.shape == (B * N, L // patch_len + 1, d_model)
        assert n_vars == N

    # Small config from the module spec (single full-extent block path).
    check(B=2, L=16, N=4, patch_len=4, d_model=32, seed=0)
    # Larger config exercising lane packing + a multi-step, evenly split grid.
    check(B=32, L=16, N=4, patch_len=4, d_model=32, seed=1)

    print("KERNEL_OK")
</pallas_src>

<mosaic_0001>
module attributes {stable_mosaic.version = 11 : i64} {
  func.func @_en_embedding_kernel(%arg0: i32, %arg1: memref<10x16xf32, #tpu.memory_space<vmem>>, %arg2: memref<16x128xf32, #tpu.memory_space<vmem>>, %arg3: memref<10x128xf32, #tpu.memory_space<vmem>>, %arg4: memref<10x128xf32, #tpu.memory_space<vmem>>) attributes {dimension_semantics = [#tpu.dimension_semantics<parallel>], iteration_bounds = array<i64: 1>, scalar_prefetch = 0 : i64, scratch_operands = 0 : i64, tpu.core_type = #tpu.core_type<tc>, window_params = [{transform_indices = @transform_0, window_bounds = array<i64: 10, 16>}, {pipeline_mode = #tpu.pipeline_mode<synchronous>, transform_indices = @transform_1, window_bounds = array<i64: 16, 128>}, {pipeline_mode = #tpu.pipeline_mode<synchronous>, transform_indices = @transform_2, window_bounds = array<i64: 10, 128>}, {transform_indices = @transform_3, window_bounds = array<i64: 10, 128>}]} {
    %c0 = arith.constant 0 : index
    %c0_0 = arith.constant 0 : index
    %0 = vector.load %arg1[%c0, %c0_0] : memref<10x16xf32, #tpu.memory_space<vmem>>, vector<10x16xf32>
    %c0_1 = arith.constant 0 : index
    %c0_2 = arith.constant 0 : index
    %1 = vector.load %arg2[%c0_1, %c0_2] : memref<16x128xf32, #tpu.memory_space<vmem>>, vector<16x128xf32>
    %cst = arith.constant dense<0.000000e+00> : vector<10x128xf32>
    %2 = tpu.matmul %0, %1, %cst {dimension_numbers = #tpu.dot_dimension_numbers<[1], [0], [0], [1], [0, 0, 1, 1], [], []>} : vector<10x16xf32>, vector<16x128xf32>, vector<10x128xf32> -> vector<10x128xf32>
    %c0_3 = arith.constant 0 : index
    %c0_4 = arith.constant 0 : index
    %3 = vector.load %arg3[%c0_3, %c0_4] : memref<10x128xf32, #tpu.memory_space<vmem>>, vector<10x128xf32>
    %4 = arith.addf %2, %3 : vector<10x128xf32>
    %c0_5 = arith.constant 0 : index
    %c0_6 = arith.constant 0 : index
    %5 = vector.load %arg4[%c0_5, %c0_6] : memref<10x128xf32, #tpu.memory_space<vmem>>, vector<10x128xf32>
    tpu.vector_store %arg4[%c0_5, %c0_6], %4 {strides = array<i32>} : memref<10x128xf32, #tpu.memory_space<vmem>>, vector<10x128xf32>,
    return
  }
  func.func @transform_0(%arg0: i32) -> (i32, i32) {
    %c0_i32 = arith.constant 0 : i32
    %c0_i32_0 = arith.constant 0 : i32
    return %arg0, %c0_i32 : i32, i32
  }
  func.func @transform_1(%arg0: i32) -> (i32, i32) {
    %c0_i32 = arith.constant 0 : i32
    %c0_i32_0 = arith.constant 0 : i32
    %c0_i32_1 = arith.constant 0 : i32
    return %c0_i32, %c0_i32_0 : i32, i32
  }
  func.func @transform_2(%arg0: i32) -> (i32, i32) {
    %c0_i32 = arith.constant 0 : i32
    %c0_i32_0 = arith.constant 0 : i32
    %c0_i32_1 = arith.constant 0 : i32
    return %c0_i32, %c0_i32_0 : i32, i32
  }
  func.func @transform_3(%arg0: i32) -> (i32, i32) {
    %c0_i32 = arith.constant 0 : i32
    %c0_i32_0 = arith.constant 0 : i32
    return %arg0, %c0_i32 : i32, i32
  }
}

module attributes {stable_mosaic.version = 11 : i64} {
  func.func @_en_embedding_kernel(%arg0: i32, %arg1: memref<10x16xf32, #tpu.memory_space<vmem>>, %arg2: memref<16x128xf32, #tpu.memory_space<vmem>>, %arg3: memref<10x128xf32, #tpu.memory_space<vmem>>, %arg4: memref<10x128xf32, #tpu.memory_space<vmem>>) attributes {dimension_semantics = [#tpu.dimension_semantics<parallel>], iteration_bounds = array<i64: 1>, scalar_prefetch = 0 : i64, scratch_operands = 0 : i64, tpu.core_type = #tpu.core_type<tc>, window_params = [{transform_indices = @transform_0, window_bounds = array<i64: 10, 16>}, {pipeline_mode = #tpu.pipeline_mode<synchronous>, transform_indices = @transform_1, window_bounds = array<i64: 16, 128>}, {pipeline_mode = #tpu.pipeline_mode<synchronous>, transform_indices = @transform_2, window_bounds = array<i64: 10, 128>}, {transform_indices = @transform_3, window_bounds = array<i64: 10, 128>}]} {
    %c0 = arith.constant 0 : index
    %c0_0 = arith.constant 0 : index
    %0 = vector.load %arg1[%c0, %c0_0] : memref<10x16xf32, #tpu.memory_space<vmem>>, vector<10x16xf32>
    %c0_1 = arith.constant 0 : index
    %c0_2 = arith.constant 0 : index
    %1 = vector.load %arg2[%c0_1, %c0_2] : memref<16x128xf32, #tpu.memory_space<vmem>>, vector<16x128xf32>
    %cst = arith.constant dense<0.000000e+00> : vector<10x128xf32>
    %2 = tpu.matmul %0, %1, %cst {dimension_numbers = #tpu.dot_dimension_numbers<[1], [0], [0], [1], [0, 0, 1, 1], [], []>} : vector<10x16xf32>, vector<16x128xf32>, vector<10x128xf32> -> vector<10x128xf32>
    %c0_3 = arith.constant 0 : index
    %c0_4 = arith.constant 0 : index
    %3 = vector.load %arg3[%c0_3, %c0_4] : memref<10x128xf32, #tpu.memory_space<vmem>>, vector<10x128xf32>
    %4 = arith.addf %2, %3 : vector<10x128xf32>
    %c0_5 = arith.constant 0 : index
    %c0_6 = arith.constant 0 : index
    %5 = vector.load %arg4[%c0_5, %c0_6] : memref<10x128xf32, #tpu.memory_space<vmem>>, vector<10x128xf32>
    tpu.vector_store %arg4[%c0_5, %c0_6], %4 {strides = array<i32>} : memref<10x128xf32, #tpu.memory_space<vmem>>, vector<10x128xf32>,
    return
  }
  func.func @transform_0(%arg0: i32) -> (i32, i32) {
    %c0_i32 = arith.constant 0 : i32
    %c0_i32_0 = arith.constant 0 : i32
    return %arg0, %c0_i32 : i32, i32
  }
  func.func @transform_1(%arg0: i32) -> (i32, i32) {
    %c0_i32 = arith.constant 0 : i32
    %c0_i32_0 = arith.constant 0 : i32
    %c0_i32_1 = arith.constant 0 : i32
    return %c0_i32, %c0_i32_0 : i32, i32
  }
  func.func @transform_2(%arg0: i32) -> (i32, i32) {
    %c0_i32 = arith.constant 0 : i32
    %c0_i32_0 = arith.constant 0 : i32
    %c0_i32_1 = arith.constant 0 : i32
    return %c0_i32, %c0_i32_0 : i32, i32
  }
  func.func @transform_3(%arg0: i32) -> (i32, i32) {
    %c0_i32 = arith.constant 0 : i32
    %c0_i32_0 = arith.constant 0 : i32
    return %arg0, %c0_i32 : i32, i32
  }
}

</mosaic_0001>

<bundles_post_ra>
// kernel: tpu_custom_call.1
= control target key start
LH: loop header
LB: loop body
LE: loop exit
PB: predicated region body
PF: predicated region fallthrough
CT: control target
= control target key end

     0   :  { %8 = vsyncpa [#allocation3], 0  ;;  %s282_s0 = inlined_call_operand.hbm [shape: f32[10,16], index: 0, kind: input, shape index: {}]   ;;  %s283_s1 = inlined_call_operand.hbm [shape: f32[16,128], index: 1, kind: input, shape index: {}]   ;;  %s284_s2 = inlined_call_operand.hbm [shape: f32[10,128], index: 2, kind: input, shape index: {}]   ;;  %s285_s3 = inlined_call_operand.hbm [shape: f32[10,128], index: 3, kind: output, shape index: {}]  }
   0x1   :  { %9 = vsyncpa [#allocation6], 0 }
   0x2   :  { %10 = vsyncpa [#allocation4], 0  ;;  %s28_s14 = sshll.u32 %s283_s1, 4  ;;  %s232_s15 = smov [#allocation5]   ;;  %s29_s14 = int_to_ptr.hbm [resolvable:$true] %s28_s14 }
   0x3   :  { %s30_s16 = sshll.u32 %s232_s15, 4  ;;  %s15_s19 = sshll.u32 %s282_s0, 4  ;;  %s31_s16 = int_to_ptr.vmem [resolvable:$true] %s30_s16  ;;  %s16_s19 = int_to_ptr.hbm [resolvable:$true] %s15_s19 }
   0x4   :  { %s233_s20 = smov 128   ;;  %s234_s21 = smov 8  }
   0x5   :  { %36 = dma.hbm_to_vmem [thread:$0]  %s29_s14, 256, %s31_s16, [#allocation6], %s233_s20, %s233_s20, %s234_s21  }
   0x6   :  { %s235_s22 = smov [#allocation2]   ;;  %s41_s1 = sshll.u32 %s284_s2, 4  ;;  %s42_s1 = int_to_ptr.hbm [resolvable:$true] %s41_s1 }
   0x7   :  { %s17_s23 = sshll.u32 %s235_s22, 4  ;;  %s236_s0 = smov [#allocation7]   ;;  %s18_s23 = int_to_ptr.vmem [resolvable:$true] %s17_s23 }
   0x8   :  { %23 = dma.hbm_to_vmem [thread:$0]  %s16_s19, 256, %s18_s23, [#allocation3], %s233_s20, %s233_s20, %s234_s21  }
   0x9   :  { %s43_s26 = sshll.u32 %s236_s0, 4  ;;  %s44_s26 = int_to_ptr.vmem [resolvable:$true] %s43_s26 }
   0xa   :  { %49 = dma.hbm_to_vmem [thread:$0]  %s42_s1, 256, %s44_s26, [#allocation6], %s233_s20, %s233_s20, %s234_s21  }
   0xb   :  { %226 = dma.done.wait [#allocation3], 256  }
   0xc   :  { %227 = vsyncadd [#allocation3], 4294967040 }
   0xd   :  { %228 = dma.done.wait [#allocation6], 512  }
   0xe   :  { %229 = vsyncadd [#allocation6], 4294966784  ;;  %v65_v0 = vld [vmem:[#allocation5 + $0x8] sm:$0xff]  ;;  %v64_v1 = vld [vmem:[#allocation5] sm:$0xff]  ;;  %vm68_vm0 = vcmask 130048   ;;  %s237_s2 = smov [#allocation8]  }
   0xf   :  { %89 = vmatpush.msra.mxu0 %v65_v0  ;;  %122 = vmatpush.msra.mxu1 %v65_v0  ;;  %v62_v2 = vld [vmem:[#allocation2] sm:$0xff]  ;;  %v63_v3 = vld [vmem:[#allocation2 + $0x8] sm:$0x3]  ;;  %s104_s27 = sshll.u32 %s237_s2, 4  ;;  %s106_s30 = sshll.u32 %s285_s3, 4  ;;  %s105_s27 = int_to_ptr.vmem [resolvable:$true] %s104_s27  ;;  %s107_s30 = int_to_ptr.hbm [resolvable:$true] %s106_s30 }
  0x10   :  { %v66_v4 = vld [vmem:[#allocation7] sm:$0xff]  ;;  %v67_v5 = vld [vmem:[#allocation7 + $0x8] sm:$0x3] }
  0x11   :  { %90 = vmatpush.msra.mxu0 %v64_v1  ;;  %123 = vmatpush.msra.mxu1 %v64_v1 }
  0x12   :  { %120 = vmatmul.msk.f32.vlgmr.msra.gmra.mxu0 %vm68_vm0, %v62_v2  ;;  %121 = vmatmul.msk.f32.vlgmr.msra.gmra.mxu1 %vm68_vm0, %v63_v3 }
  0x8f   :  { %v92_v6 = vpop.f32.mrf.mxu0  ;;  %v95_v7 = vpop.f32.mrf.mxu1 }
  0x90   :  { %v93_v8 = vadd.f32 %v92_v6, %v66_v4  ;;  %v96_v9 = vadd.f32 %v95_v7, %v67_v5 }
  0x92   :  { %98 = vst [vmem:[#allocation8] sm:$0xff] %v93_v8 }
  0x93   :  { %99 = vst [vmem:[#allocation8 + $0x8] sm:$0x3] %v96_v9 }
  0x94   :  { %112 = dma.vmem_to_hbm [thread:$0]  %s105_s27, 256, %s107_s30, [#allocation4], %s233_s20, %s233_s20, %s234_s21  }
  0x95   :  { %230 = dma.done.wait [#allocation4], 256  }
  0x96   :  { %231 = vsyncadd [#allocation4], 4294967040 }
  0x97   :  { %117 = vsyncpa [#allocation3], 1 }
  0x98   :  { %118 = vsyncpa [#allocation6], 1 }
  0x99   :  { %119 = vsyncpa [#allocation4], 1 }

// kernel: tpu_custom_call.1
= control target key start
LH: loop header
LB: loop body
LE: loop exit
PB: predicated region body
PF: predicated region fallthrough
CT: control target
= control target key end

     0   :  { %8 = vsyncpa [#allocation3], 0  ;;  %s282_s0 = inlined_call_operand.hbm [shape: f32[10,16], index: 0, kind: input, shape index: {}]   ;;  %s283_s1 = inlined_call_operand.hbm [shape: f32[16,128], index: 1, kind: input, shape index: {}]   ;;  %s284_s2 = inlined_call_operand.hbm [shape: f32[10,128], index: 2, kind: input, shape index: {}]   ;;  %s285_s3 = inlined_call_operand.hbm [shape: f32[10,128], index: 3, kind: output, shape index: {}]  }
   0x1   :  { %9 = vsyncpa [#allocation6], 0 }
   0x2   :  { %10 = vsyncpa [#allocation4], 0  ;;  %s28_s14 = sshll.u32 %s283_s1, 4  ;;  %s232_s15 = smov [#allocation5]   ;;  %s29_s14 = int_to_ptr.hbm [resolvable:$true] %s28_s14 }
   0x3   :  { %s30_s16 = sshll.u32 %s232_s15, 4  ;;  %s15_s19 = sshll.u32 %s282_s0, 4  ;;  %s31_s16 = int_to_ptr.vmem [resolvable:$true] %s30_s16  ;;  %s16_s19 = int_to_ptr.hbm [resolvable:$true] %s15_s19 }
   0x4   :  { %s233_s20 = smov 128   ;;  %s234_s21 = smov 8  }
   0x5   :  { %36 = dma.hbm_to_vmem [thread:$0]  %s29_s14, 256, %s31_s16, [#allocation6], %s233_s20, %s233_s20, %s234_s21  }
   0x6   :  { %s235_s22 = smov [#allocation2]   ;;  %s41_s1 = sshll.u32 %s284_s2, 4  ;;  %s42_s1 = int_to_ptr.hbm [resolvable:$true] %s41_s1 }
   0x7   :  { %s17_s23 = sshll.u32 %s235_s22, 4  ;;  %s236_s0 = smov [#allocation7]   ;;  %s18_s23 = int_to_ptr.vmem [resolvable:$true] %s17_s23 }
   0x8   :  { %23 = dma.hbm_to_vmem [thread:$0]  %s16_s19, 256, %s18_s23, [#allocation3], %s233_s20, %s233_s20, %s234_s21  }
   0x9   :  { %s43_s26 = sshll.u32 %s236_s0, 4  ;;  %s44_s26 = int_to_ptr.vmem [resolvable:$true] %s43_s26 }
   0xa   :  { %49 = dma.hbm_to_vmem [thread:$0]  %s42_s1, 256, %s44_s26, [#allocation6], %s233_s20, %s233_s20, %s234_s21  }
   0xb   :  { %226 = dma.done.wait [#allocation3], 256  }
   0xc   :  { %227 = vsyncadd [#allocation3], 4294967040 }
   0xd   :  { %228 = dma.done.wait [#allocation6], 512  }
   0xe   :  { %229 = vsyncadd [#allocation6], 4294966784  ;;  %v65_v0 = vld [vmem:[#allocation5 + $0x8] sm:$0xff]  ;;  %v64_v1 = vld [vmem:[#allocation5] sm:$0xff]  ;;  %vm68_vm0 = vcmask 130048   ;;  %s237_s2 = smov [#allocation8]  }
   0xf   :  { %89 = vmatpush.msra.mxu0 %v65_v0  ;;  %122 = vmatpush.msra.mxu1 %v65_v0  ;;  %v62_v2 = vld [vmem:[#allocation2] sm:$0xff]  ;;  %v63_v3 = vld [vmem:[#allocation2 + $0x8] sm:$0x3]  ;;  %s104_s27 = sshll.u32 %s237_s2, 4  ;;  %s106_s30 = sshll.u32 %s285_s3, 4  ;;  %s105_s27 = int_to_ptr.vmem [resolvable:$true] %s104_s27  ;;  %s107_s30 = int_to_ptr.hbm [resolvable:$true] %s106_s30 }
  0x10   :  { %v66_v4 = vld [vmem:[#allocation7] sm:$0xff]  ;;  %v67_v5 = vld [vmem:[#allocation7 + $0x8] sm:$0x3] }
  0x11   :  { %90 = vmatpush.msra.mxu0 %v64_v1  ;;  %123 = vmatpush.msra.mxu1 %v64_v1 }
  0x12   :  { %120 = vmatmul.msk.f32.vlgmr.msra.gmra.mxu0 %vm68_vm0, %v62_v2  ;;  %121 = vmatmul.msk.f32.vlgmr.msra.gmra.mxu1 %vm68_vm0, %v63_v3 }
  0x8f   :  { %v92_v6 = vpop.f32.mrf.mxu0  ;;  %v95_v7 = vpop.f32.mrf.mxu1 }
  0x90   :  { %v93_v8 = vadd.f32 %v92_v6, %v66_v4  ;;  %v96_v9 = vadd.f32 %v95_v7, %v67_v5 }
  0x92   :  { %98 = vst [vmem:[#allocation8] sm:$0xff] %v93_v8 }
  0x93   :  { %99 = vst [vmem:[#allocation8 + $0x8] sm:$0x3] %v96_v9 }
  0x94   :  { %112 = dma.vmem_to_hbm [thread:$0]  %s105_s27, 256, %s107_s30, [#allocation4], %s233_s20, %s233_s20, %s234_s21  }
  0x95   :  { %230 = dma.done.wait [#allocation4], 256  }
  0x96   :  { %231 = vsyncadd [#allocation4], 4294967040 }
  0x97   :  { %117 = vsyncpa [#allocation3], 1 }
  0x98   :  { %118 = vsyncpa [#allocation6], 1 }
  0x99   :  { %119 = vsyncpa [#allocation4], 1 }

</bundles_post_ra>
